<compile_context>
chip_gen: v7x
topology: tpu7x:2x2x1
jax: 0.10.0
libtpu: 0.0.40
codegen_flags: <defaults>
</compile_context>

<pallas_src>
import functools

import jax
import jax.numpy as jnp
from jax import lax
from jax.experimental import pallas as pl
from jax.experimental.pallas import tpu as pltpu


F_IN = 4                      # linear1 input features
F_OUT = 2                     # linear2 output features
GROUP = 128 // F_OUT          # 64 batch rows packed per 128-lane output row
IN_LANES = GROUP * F_IN       # 256 lanes per packed input row
OUT_LANES = GROUP * F_OUT     # 128 lanes per packed output row


def fused_affine_kernel(x_ref, w_ref, b_ref, o_ref):
    """Fused affine on one lane-dense packed batch tile.

    x_ref: (TBP, 256)  -- 64 batch rows x 4 features per packed row (streamed)
    w_ref: (256, 128)  -- block-diagonal replication of fused (4,2) weight (resident)
    b_ref: (1, 128)    -- lane-tiled fused bias (resident)
    o_ref: (TBP, 128)  -- 64 batch rows x 2 outputs per packed row
    """
    acc = jnp.dot(x_ref[...], w_ref[...],
                  preferred_element_type=jnp.float32,
                  precision=lax.Precision.HIGHEST)
    o_ref[...] = (acc + b_ref[...]).astype(o_ref.dtype)


def _packed_affine(x_mat, w_eff, b_eff, rows_per_tile):
    """Apply y = x @ w_eff + b_eff for x_mat of shape (B, 4), B % 64 == 0."""
    B = x_mat.shape[0]
    assert B % GROUP == 0
    pr = B // GROUP                              # packed rows

    # Free row-major reshape: each packed row holds GROUP consecutive batch rows.
    x_packed = x_mat.reshape(pr, IN_LANES)

    # Block-diagonal fused weight: out_packed = x_packed @ w_big + b_big applies
    # GROUP independent 4->2 affine maps per packed row.  Built once per call
    # (128 KiB) in plain XLA -- negligible vs. the batch stream.
    eye = jnp.eye(GROUP, dtype=w_eff.dtype)
    w_big = (eye[:, None, :, None] * w_eff[None, :, None, :]).reshape(IN_LANES, OUT_LANES)
    b_big = jnp.tile(b_eff.reshape(1, F_OUT), (1, GROUP))          # (1, 128)

    # Batch (packed-row) tiling: large tiles so the ~0.35us per-grid-step
    # overhead is amortized; capped so double-buffered in+out blocks stay
    # under ~24 MiB of VMEM on every chip generation.
    itemsize = x_mat.dtype.itemsize
    bytes_per_packed_row = (IN_LANES + OUT_LANES) * itemsize
    vmem_block_budget = 24 << 20
    tbp_cap = max(8, (vmem_block_budget // (2 * bytes_per_packed_row)) // 8 * 8)
    tbp_target = max(8, (rows_per_tile // GROUP) // 8 * 8)
    tbp_target = min(tbp_target, tbp_cap)
    tbp = pr if pr <= tbp_target else tbp_target
    grid = (pl.cdiv(pr, tbp),)

    out_packed = pl.pallas_call(
        fused_affine_kernel,
        out_shape=jax.ShapeDtypeStruct((pr, OUT_LANES), x_mat.dtype),
        grid_spec=pltpu.PrefetchScalarGridSpec(
            num_scalar_prefetch=0,
            grid=grid,
            in_specs=[
                pl.BlockSpec((tbp, IN_LANES), lambda i: (i, 0)),        # streamed x tile
                pl.BlockSpec((IN_LANES, OUT_LANES), lambda i: (0, 0)),  # resident weight
                pl.BlockSpec((1, OUT_LANES), lambda i: (0, 0)),         # resident bias
            ],
            out_specs=pl.BlockSpec((tbp, OUT_LANES), lambda i: (i, 0)),
        ),
        compiler_params=pltpu.CompilerParams(
            dimension_semantics=("parallel",),
            vmem_limit_bytes=32 << 20,
        ),
    )(x_packed, w_big, b_big)

    return out_packed.reshape(B, F_OUT)


@functools.partial(jax.jit, static_argnames=("rows_per_tile",))
def mlp_forward(x, w1, b1, w2, b2, *, rows_per_tile=131072):
    """Forward pass of MyModel: (x @ W1 + b1) @ W2 + b2, weights stored (in, out)."""
    B = x.shape[0]
    hp = lax.Precision.HIGHEST

    # Algebraic fusion of the two stacked linears (no nonlinearity between them).
    w_eff = jnp.dot(w1, w2, precision=hp)                                   # (4, 2)
    b_eff = jnp.dot(b1.reshape(1, -1), w2, precision=hp) + b2.reshape(1, -1)  # (1, 2)

    b_main = (B // GROUP) * GROUP
    outs = []
    if b_main > 0:
        x_main = x if b_main == B else x[:b_main]
        outs.append(_packed_affine(x_main, w_eff, b_eff, rows_per_tile))
    if b_main < B:
        # Ragged tail (< 64 rows): trivial plain-XLA epilogue instead of a
        # full-array pad + slice (which would double the HBM traffic).
        outs.append(jnp.dot(x[b_main:], w_eff, precision=hp) + b_eff)
    return outs[0] if len(outs) == 1 else jnp.concatenate(outs, axis=0)


def init_params(key):
    # Mirror torch.nn.Linear init: uniform(-1/sqrt(fan_in), +1/sqrt(fan_in)).
    k1, k2, k3, k4 = jax.random.split(key, 4)
    bound1 = 1.0 / jnp.sqrt(4.0)
    bound2 = 1.0 / jnp.sqrt(4.0)
    # Stored as (in, out) so the math is x @ W (== torch's x @ W^T).
    w1 = jax.random.uniform(k1, (4, 4), jnp.float32, -bound1, bound1)
    b1 = jax.random.uniform(k2, (1, 4), jnp.float32, -bound1, bound1)
    w2 = jax.random.uniform(k3, (4, 2), jnp.float32, -bound2, bound2)
    b2 = jax.random.uniform(k4, (1, 2), jnp.float32, -bound2, bound2)
    return w1, b1, w2, b2


if __name__ == "__main__":
    key = jax.random.PRNGKey(0)
    kx, kp = jax.random.split(key)
    w1, b1, w2, b2 = init_params(kp)

    def reference(xv):
        hp = lax.Precision.HIGHEST
        h = jnp.dot(xv, w1, precision=hp) + b1
        return jnp.dot(h, w2, precision=hp) + b2

    # Main path: B a multiple of 64 -> fully lane-dense packed kernel, one tile.
    B = 4096
    x = jax.random.normal(kx, (B, F_IN), jnp.float32)
    out = jax.block_until_ready(mlp_forward(x, w1, b1, w2, b2))
    assert out.shape == (B, F_OUT)
    assert jnp.allclose(out, reference(x), atol=1e-4, rtol=1e-4)

    # Multi-step grid coverage (small tile override just for testing).
    out2 = jax.block_until_ready(mlp_forward(x, w1, b1, w2, b2, rows_per_tile=512))
    assert jnp.allclose(out2, reference(x), atol=1e-4, rtol=1e-4)

    # Ragged batch: 1000 rows = 960 through the kernel + 40-row XLA tail.
    x3 = jax.random.normal(jax.random.fold_in(kx, 1), (1000, F_IN), jnp.float32)
    out3 = jax.block_until_ready(mlp_forward(x3, w1, b1, w2, b2))
    assert out3.shape == (1000, F_OUT)
    assert jnp.allclose(out3, reference(x3), atol=1e-4, rtol=1e-4)

    print("KERNEL_OK")
</pallas_src>

<mosaic_0001>
module attributes {stable_mosaic.version = 11 : i64} {
  func.func @fused_affine_kernel(%arg0: i32, %arg1: memref<64x256xf32, #tpu.memory_space<vmem>>, %arg2: memref<256x128xf32, #tpu.memory_space<vmem>>, %arg3: memref<1x128xf32, #tpu.memory_space<vmem>>, %arg4: memref<64x128xf32, #tpu.memory_space<vmem>>) attributes {dimension_semantics = [#tpu.dimension_semantics<parallel>], iteration_bounds = array<i64: 1>, scalar_prefetch = 0 : i64, scratch_operands = 0 : i64, tpu.core_type = #tpu.core_type<tc>, window_params = [{transform_indices = @transform_0, window_bounds = array<i64: 64, 256>}, {pipeline_mode = #tpu.pipeline_mode<synchronous>, transform_indices = @transform_1, window_bounds = array<i64: 256, 128>}, {pipeline_mode = #tpu.pipeline_mode<synchronous>, transform_indices = @transform_2, window_bounds = array<i64: 1, 128>}, {transform_indices = @transform_3, window_bounds = array<i64: 64, 128>}]} {
    %c0 = arith.constant 0 : index
    %c0_0 = arith.constant 0 : index
    %0 = vector.load %arg1[%c0, %c0_0] : memref<64x256xf32, #tpu.memory_space<vmem>>, vector<64x256xf32>
    %c0_1 = arith.constant 0 : index
    %c0_2 = arith.constant 0 : index
    %1 = vector.load %arg2[%c0_1, %c0_2] : memref<256x128xf32, #tpu.memory_space<vmem>>, vector<256x128xf32>
    %cst = arith.constant dense<0.000000e+00> : vector<64x128xf32>
    %2 = tpu.matmul %0, %1, %cst {dimension_numbers = #tpu.dot_dimension_numbers<[1], [0], [0], [1], [0, 0, 1, 1], [], []>, precision = #tpu.contract_precision<fp32>} : vector<64x256xf32>, vector<256x128xf32>, vector<64x128xf32> -> vector<64x128xf32>
    %c0_3 = arith.constant 0 : index
    %c0_4 = arith.constant 0 : index
    %3 = vector.load %arg3[%c0_3, %c0_4] : memref<1x128xf32, #tpu.memory_space<vmem>>, vector<1x128xf32>
    %4 = vector.broadcast %3 : vector<1x128xf32> to vector<64x128xf32>
    %5 = arith.addf %2, %4 : vector<64x128xf32>
    %c0_5 = arith.constant 0 : index
    %c0_6 = arith.constant 0 : index
    %6 = vector.load %arg4[%c0_5, %c0_6] : memref<64x128xf32, #tpu.memory_space<vmem>>, vector<64x128xf32>
    tpu.vector_store %arg4[%c0_5, %c0_6], %5 {strides = array<i32>} : memref<64x128xf32, #tpu.memory_space<vmem>>, vector<64x128xf32>,
    return
  }
  func.func @transform_0(%arg0: i32) -> (i32, i32) {
    %c0_i32 = arith.constant 0 : i32
    %c0_i32_0 = arith.constant 0 : i32
    return %arg0, %c0_i32 : i32, i32
  }
  func.func @transform_1(%arg0: i32) -> (i32, i32) {
    %c0_i32 = arith.constant 0 : i32
    %c0_i32_0 = arith.constant 0 : i32
    %c0_i32_1 = arith.constant 0 : i32
    return %c0_i32, %c0_i32_0 : i32, i32
  }
  func.func @transform_2(%arg0: i32) -> (i32, i32) {
    %c0_i32 = arith.constant 0 : i32
    %c0_i32_0 = arith.constant 0 : i32
    %c0_i32_1 = arith.constant 0 : i32
    return %c0_i32, %c0_i32_0 : i32, i32
  }
  func.func @transform_3(%arg0: i32) -> (i32, i32) {
    %c0_i32 = arith.constant 0 : i32
    %c0_i32_0 = arith.constant 0 : i32
    return %arg0, %c0_i32 : i32, i32
  }
}

</mosaic_0001>

<bundles_post_ra>
// kernel: mlp_forward.1
= control target key start
LH: loop header
LB: loop body
LE: loop exit
PB: predicated region body
PF: predicated region fallthrough
CT: control target
= control target key end

     0   :  { %s2678_s1 = inlined_call_operand.vmem [shape: f32[256,128], index: 1, kind: input, shape index: {}]   ;;  %s2679_s0 = inlined_call_operand.vmem [shape: f32[64,256], index: 0, kind: input, shape index: {}]   ;;  %s2680_s2 = inlined_call_operand.vmem [shape: f32[1,128], index: 2, kind: input, shape index: {}]   ;;  %s2681_s3 = inlined_call_operand.vmem [shape: f32[64,128], index: 3, kind: output, shape index: {}]  }
   0x1   :  { %v46_v0 = vld [vmem:[%s2678_s1 + $0x80] sm:$0xff]  ;;  %v47_v1 = vld [vmem:[%s2678_s1 + $0x88] sm:$0xff]  ;;  %v48_v7 = vld [vmem:[%s2678_s1 + $0x90] sm:$0xff] }
   0x2   :  { %v30_v2 = vld [vmem:[%s2678_s1] sm:$0xff]  ;;  %v118_v3 = vand.u32 4294901760, %v46_v0  ;;  %v121_v4 = vand.u32 4294901760, %v47_v1  ;;  %v31_v5 = vld [vmem:[%s2678_s1 + $0x8] sm:$0xff]  ;;  %v49_v8 = vld [vmem:[%s2678_s1 + $0x98] sm:$0xff]  ;;  %v124_v10 = vand.u32 4294901760, %v48_v7 }
   0x3   :  { %v70_v6 = vand.u32 4294901760, %v30_v2  ;;  %v73_v9 = vand.u32 4294901760, %v31_v5  ;;  %v127_v11 = vand.u32 4294901760, %v49_v8  ;;  %v32_v12 = vld [vmem:[%s2678_s1 + $0x10] sm:$0xff]  ;;  %v33_v13 = vld [vmem:[%s2678_s1 + $0x18] sm:$0xff]  ;;  %v50_v18 = vld [vmem:[%s2678_s1 + $0xa0] sm:$0xff] }
   0x4   :  { %v1908_v14 = vpack.c.bf16 %v121_v4, %v118_v3  ;;  %v76_v16 = vand.u32 4294901760, %v32_v12  ;;  %v79_v17 = vand.u32 4294901760, %v33_v13  ;;  %v51_v19 = vld [vmem:[%s2678_s1 + $0xa8] sm:$0xff]  ;;  %v1924_v23 = vsub.f32 %v48_v7, %v124_v10  ;;  %v34_v24 = vld [vmem:[%s2678_s1 + $0x20] sm:$0xff]  ;;  %v52_v38 = vld [vmem:[%s2678_s1 + $0xb0] sm:$0xff] }
   0x5   :  { %v1910_v15 = vsub.f32 %v30_v2, %v70_v6  ;;  %v1918_v20 = vpack.c.bf16 %v73_v9, %v70_v6  ;;  %v1920_v21 = vsub.f32 %v31_v5, %v73_v9  ;;  %v1922_v22 = vpack.c.bf16 %v127_v11, %v124_v10  ;;  %v35_v25 = vld [vmem:[%s2678_s1 + $0x28] sm:$0xff]  ;;  %v53_v43 = vld [vmem:[%s2678_s1 + $0xb8] sm:$0xff]  ;;  %v36_v56 = vld [vmem:[%s2678_s1 + $0x30] sm:$0xff] }
   0x6   :  { %2787 = vst [vmem:[#allocation2_spill] sm:$0xff] %v1908_v14  ;;  %1673 = vmatprep.subr.bf16.mxu0 %v1908_v14  ;;  %v1933_v26 = vsub.f32 %v49_v8, %v127_v11  ;;  %v1935_v27 = vpack.c.bf16 %v79_v17, %v76_v16  ;;  %v1937_v28 = vsub.f32 %v32_v12, %v76_v16  ;;  %v130_v30 = vand.u32 4294901760, %v50_v18  ;;  %v37_v57 = vld [vmem:[%s2678_s1 + $0x38] sm:$0xff]  ;;  %v54_v6 = vld [vmem:[%s2678_s1 + $0xc0] sm:$0xff]  ;;  %v55_v7 = vld [vmem:[%s2678_s1 + $0xc8] sm:$0xff] }
   0x7   :  { %2788 = vst [vmem:[#allocation3_spill] sm:$0xff] %v1918_v20  ;;  %v1939_v29 = vsub.f32 %v33_v13, %v79_v17  ;;  %1675 = vmatpush3.bf16.msra.mxu0 %v1918_v20  ;;  %v133_v31 = vand.u32 4294901760, %v51_v19  ;;  %v1942_v32 = vsub.f32 %v46_v0, %v118_v3  ;;  %v1944_v33 = vsub.f32 %v47_v1, %v121_v4  ;;  %v38_v12 = vld [vmem:[%s2678_s1 + $0x40] sm:$0xff] }
   0x8   :  { %1677 = vmatprep.subr.bf16.mxu0 %v1922_v22  ;;  %v82_v34 = vand.u32 4294901760, %v34_v24  ;;  %v85_v35 = vand.u32 4294901760, %v35_v25  ;;  %v2699_v36 = vand.u32 4294901760, %v1910_v15  ;;  %v2697_v37 = vand.u32 4294901760, %v1920_v21 }
   0x9   :  { %v1952_v39 = vpack.c.bf16 %v133_v31, %v130_v30  ;;  %v1954_v40 = vsub.f32 %v50_v18, %v130_v30  ;;  %v1956_v41 = vsub.f32 %v51_v19, %v133_v31  ;;  %v2703_v42 = vand.u32 4294901760, %v1942_v32  ;;  %v39_v31 = vld [vmem:[%s2678_s1 + $0x48] sm:$0xff] }
   0xa   :  { %v2702_v44 = vand.u32 4294901760, %v1944_v33  ;;  %v1963_v45 = vpack.c.bf16 %v85_v35, %v82_v34  ;;  %v1965_v46 = vsub.f32 %v34_v24, %v82_v34  ;;  %v1967_v47 = vsub.f32 %v35_v25, %v85_v35 }
   0xb   :  { %2789 = vst [vmem:[#allocation4_spill] sm:$0xff] %v1952_v39  ;;  %1679 = vmatpush3.bf16.msra.mxu0 %v1935_v27  ;;  %v402_v48 = vsub.f32 %v1942_v32, %v2703_v42  ;;  %v290_v49 = vsub.f32 %v1910_v15, %v2699_v36  ;;  %v297_v50 = vsub.f32 %v1920_v21, %v2697_v37  ;;  %v136_v51 = vand.u32 4294901760, %v52_v38 }
   0xc   :  { %1681 = vmatprep.subr.bf16.mxu0 %v1952_v39  ;;  %v409_v52 = vsub.f32 %v1944_v33, %v2702_v44  ;;  %v139_v53 = vand.u32 4294901760, %v53_v43  ;;  %v2696_v54 = vand.u32 4294901760, %v1924_v23  ;;  %v2694_v55 = vand.u32 4294901760, %v1933_v26 }
   0xd   :  { %v403_v58 = vand.u32 4294901760, %v402_v48  ;;  %v291_v59 = vand.u32 4294901760, %v290_v49  ;;  %v298_v60 = vand.u32 4294901760, %v297_v50  ;;  %v1991_v61 = vsub.f32 %v52_v38, %v136_v51 }
   0xe   :  { %v410_v62 = vand.u32 4294901760, %v409_v52  ;;  %v1993_v63 = vpack.c.bf16 %v139_v53, %v136_v51  ;;  %v1995_v0 = vsub.f32 %v53_v43, %v139_v53  ;;  %v416_v1 = vsub.f32 %v1924_v23, %v2696_v54 }
   0xf   :  { %1683 = vmatpush3.bf16.msra.mxu0 %v1963_v45  ;;  %v1706_v2 = vpack.c.bf16 %v298_v60, %v291_v59  ;;  %v423_v3 = vsub.f32 %v1933_v26, %v2694_v55  ;;  %v88_v4 = vand.u32 4294901760, %v36_v56  ;;  %v91_v5 = vand.u32 4294901760, %v37_v57  ;;  %v57_v59 = vld [vmem:[%s2678_s1 + $0xd8] sm:$0xff] }
  0x10   :  { %v1704_v8 = vpack.c.bf16 %v410_v62, %v403_v58  ;;  %1685 = vmatprep.subr.bf16.mxu0 %v1993_v63  ;;  %v417_v9 = vand.u32 4294901760, %v416_v1  ;;  %v2693_v10 = vand.u32 4294901760, %v1937_v28  ;;  %v2692_v11 = vand.u32 4294901760, %v1939_v29  ;;  %v56_v58 = vld [vmem:[%s2678_s1 + $0xd0] sm:$0xff] }
  0x11   :  { %v424_v13 = vand.u32 4294901760, %v423_v3  ;;  %v2016_v16 = vpack.c.bf16 %v91_v5, %v88_v4  ;;  %v2018_v17 = vsub.f32 %v36_v56, %v88_v4  ;;  %v2020_v18 = vsub.f32 %v37_v57, %v91_v5  ;;  %v40_v3 = vld [vmem:[%s2678_s1 + $0x50] sm:$0xff] }
  0x12   :  { %1705 = vmatprep.subr.bf16.mxu1 %v1704_v8  ;;  %v304_v19 = vsub.f32 %v1937_v28, %v2693_v10  ;;  %v311_v24 = vsub.f32 %v1939_v29, %v2692_v11  ;;  %v142_v25 = vand.u32 4294901760, %v54_v6  ;;  %v145_v30 = vand.u32 4294901760, %v55_v7 }
  0x13   :  { %2790 = vst [vmem:[#allocation5_spill] sm:$0xff] %v2016_v16  ;;  %1707 = vmatpush3.bf16.msra.mxu1 %v1706_v2  ;;  %v1708_v34 = vpack.c.bf16 %v424_v13, %v417_v9  ;;  %1687 = vmatpush3.bf16.msra.mxu0 %v2016_v16  ;;  %v2689_v35 = vand.u32 4294901760, %v1954_v40  ;;  %v2687_v38 = vand.u32 4294901760, %v1956_v41  ;;  %v94_v43 = vand.u32 4294901760, %v38_v12 }
  0x14   :  { %v305_v48 = vand.u32 4294901760, %v304_v19  ;;  %v312_v49 = vand.u32 4294901760, %v311_v24  ;;  %v2034_v50 = vpack.c.bf16 %v145_v30, %v142_v25  ;;  %v2036_v51 = vsub.f32 %v54_v6, %v142_v25  ;;  %v41_v19 = vld [vmem:[%s2678_s1 + $0x58] sm:$0xff] }
  0x15   :  { %1709 = vmatprep.subr.bf16.mxu1 %v1708_v34  ;;  %v2038_v52 = vsub.f32 %v55_v7, %v145_v30  ;;  %v430_v53 = vsub.f32 %v1954_v40, %v2689_v35  ;;  %v437_v56 = vsub.f32 %v1956_v41, %v2687_v38  ;;  %v97_v57 = vand.u32 4294901760, %v39_v31 }
  0x16   :  { %2791 = vst [vmem:[#allocation6_spill] sm:$0xff] %v2034_v50  ;;  %v1710_v60 = vpack.c.bf16 %v312_v49, %v305_v48  ;;  %1689 = vmatprep.subr.bf16.mxu0 %v2034_v50  ;;  %v2053_v62 = vsub.f32 %v38_v12, %v94_v43  ;;  %v2686_v1 = vand.u32 4294901760, %v1965_v46  ;;  %v2684_v2 = vand.u32 4294901760, %v1967_v47  ;;  %v22_v50 = vld [vmem:[%s2679_s0 + $0x40] sm:$0xff] }
  0x17   :  { %v431_v4 = vand.u32 4294901760, %v430_v53  ;;  %v438_v5 = vand.u32 4294901760, %v437_v56  ;;  %v2060_v6 = vpack.c.bf16 %v97_v57, %v94_v43  ;;  %v2062_v7 = vsub.f32 %v39_v31, %v97_v57 }
  0x18   :  { %1711 = vmatpush3.bf16.msra.mxu1 %v1710_v60  ;;  %v318_v8 = vsub.f32 %v1965_v46, %v2686_v1  ;;  %v325_v9 = vsub.f32 %v1967_v47, %v2684_v2  ;;  %v148_v12 = vand.u32 4294901760, %v56_v58  ;;  %v151_v13 = vand.u32 4294901760, %v57_v59 }
  0x19   :  { %2792 = vst [vmem:[#allocation7_spill] sm:$0xff] %v2060_v6  ;;  %v1712_v24 = vpack.c.bf16 %v438_v5, %v431_v4  ;;  %1691 = vmatpush3.bf16.msra.mxu0 %v2060_v6  ;;  %v2683_v25 = vand.u32 4294901760, %v1991_v61  ;;  %v2682_v30 = vand.u32 4294901760, %v1995_v0  ;;  %v100_v31 = vand.u32 4294901760, %v40_v3  ;;  %v58_v4 = vld [vmem:[%s2678_s1 + $0xe0] sm:$0xff] }
  0x1a   :  { %v319_v34 = vand.u32 4294901760, %v318_v8  ;;  %v326_v43 = vand.u32 4294901760, %v325_v9  ;;  %v2076_v48 = vpack.c.bf16 %v151_v13, %v148_v12  ;;  %v2078_v49 = vsub.f32 %v56_v58, %v148_v12  ;;  %v59_v58 = vld [vmem:[%s2678_s1 + $0xe8] sm:$0xff]  ;;  %v42_v12 = vld [vmem:[%s2678_s1 + $0x60] sm:$0xff] }
  0x1b   :  { %1713 = vmatprep.subr.bf16.mxu1 %v1712_v24  ;;  %v2080_v53 = vsub.f32 %v57_v59, %v151_v13  ;;  %v444_v56 = vsub.f32 %v1991_v61, %v2683_v25  ;;  %v451_v57 = vsub.f32 %v1995_v0, %v2682_v30  ;;  %v103_v60 = vand.u32 4294901760, %v41_v19 }
  0x1c   :  { %2793 = vst [vmem:[#allocation8_spill] sm:$0xff] %v2076_v48  ;;  %v1714_v5 = vpack.c.bf16 %v326_v43, %v319_v34  ;;  %1693 = vmatprep.subr.bf16.mxu0 %v2076_v48  ;;  %v2095_v59 = vsub.f32 %v40_v3, %v100_v31  ;;  %v2685_v8 = vand.u32 4294901760, %v2018_v17  ;;  %v2688_v9 = vand.u32 4294901760, %v2020_v18 }
  0x1d   :  { %v445_v13 = vand.u32 4294901760, %v444_v56  ;;  %v452_v24 = vand.u32 4294901760, %v451_v57  ;;  %v2102_v30 = vpack.c.bf16 %v103_v60, %v100_v31  ;;  %v2104_v25 = vsub.f32 %v41_v19, %v103_v60  ;;  %v43_v56 = vld [vmem:[%s2678_s1 + $0x68] sm:$0xff] }
  0x1e   :  { %1715 = vmatpush3.bf16.msra.mxu1 %v1714_v5  ;;  %v332_v3 = vsub.f32 %v2018_v17, %v2685_v8  ;;  %v339_v34 = vsub.f32 %v2020_v18, %v2688_v9  ;;  %v154_v43 = vand.u32 4294901760, %v58_v4  ;;  %v157_v2 = vand.u32 4294901760, %v59_v58 }
  0x1f   :  { %2794 = vst [vmem:[#allocation9_spill] sm:$0xff] %v2102_v30  ;;  %v1716_v57 = vpack.c.bf16 %v452_v24, %v445_v13  ;;  %1695 = vmatpush3.bf16.msra.mxu0 %v2102_v30  ;;  %v2691_v19 = vand.u32 4294901760, %v2036_v51  ;;  %v2690_v31 = vand.u32 4294901760, %v2038_v52  ;;  %v106_v60 = vand.u32 4294901760, %v42_v12 }
  0x20   :  { %v333_v5 = vand.u32 4294901760, %v332_v3  ;;  %v340_v8 = vand.u32 4294901760, %v339_v34  ;;  %v2118_v1 = vpack.c.bf16 %v157_v2, %v154_v43  ;;  %v2120_v38 = vsub.f32 %v58_v4, %v154_v43  ;;  %v60_v3 = vld [vmem:[%s2678_s1 + $0xf0] sm:$0xff]  ;;  %v61_v4 = vld [vmem:[%s2678_s1 + $0xf8] sm:$0xff] }
  0x21   :  { %1717 = vmatprep.subr.bf16.mxu1 %v1716_v57  ;;  %v2122_v9 = vsub.f32 %v59_v58, %v157_v2  ;;  %v458_v13 = vsub.f32 %v2036_v51, %v2691_v19  ;;  %v465_v24 = vsub.f32 %v2038_v52, %v2690_v31  ;;  %v109_v35 = vand.u32 4294901760, %v43_v56  ;;  %v44_v57 = vld [vmem:[%s2678_s1 + $0x70] sm:$0xff] }
  0x22   :  { %2795 = vst [vmem:[#allocation10_spill] sm:$0xff] %v2118_v1  ;;  %v1718_v34 = vpack.c.bf16 %v340_v8, %v333_v5  ;;  %1697 = vmatprep.subr.bf16.mxu0 %v2118_v1  ;;  %v2137_v2 = vsub.f32 %v42_v12, %v106_v60  ;;  %v2695_v58 = vand.u32 4294901760, %v2053_v62  ;;  %v2698_v43 = vand.u32 4294901760, %v2062_v7 }
  0x23   :  { %v459_v31 = vand.u32 4294901760, %v458_v13  ;;  %v466_v19 = vand.u32 4294901760, %v465_v24  ;;  %v2144_v11 = vpack.c.bf16 %v109_v35, %v106_v60  ;;  %v2146_v10 = vsub.f32 %v43_v56, %v109_v35  ;;  %v45_v13 = vld [vmem:[%s2678_s1 + $0x78] sm:$0xff] }
  0x24   :  { %1719 = vmatpush3.bf16.msra.mxu1 %v1718_v34  ;;  %v346_v8 = vsub.f32 %v2053_v62, %v2695_v58  ;;  %v353_v12 = vsub.f32 %v2062_v7, %v2698_v43  ;;  %v160_v5 = vand.u32 4294901760, %v60_v3  ;;  %v163_v55 = vand.u32 4294901760, %v61_v4 }
  0x25   :  { %2796 = vst [vmem:[#allocation11_spill] sm:$0xff] %v2144_v11  ;;  %v1720_v24 = vpack.c.bf16 %v466_v19, %v459_v31  ;;  %1699 = vmatpush3.bf16.msra.mxu0 %v2144_v11  ;;  %v2701_v35 = vand.u32 4294901760, %v2078_v49  ;;  %v2700_v56 = vand.u32 4294901760, %v2080_v53  ;;  %v112_v60 = vand.u32 4294901760, %v44_v57 }
  0x26   :  { %v347_v34 = vand.u32 4294901760, %v346_v8  ;;  %v354_v58 = vand.u32 4294901760, %v353_v12  ;;  %v2160_v54 = vpack.c.bf16 %v163_v55, %v160_v5  ;;  %v2162_v37 = vsub.f32 %v60_v3, %v160_v5  ;;  %v15_v8 = vld [vmem:[%s2679_s0 + $0x8] sm:$0xff]  ;;  %v14_v3 = vld [vmem:[%s2679_s0] sm:$0xff] }
  0x27   :  { %1721 = vmatprep.subr.bf16.mxu1 %v1720_v24  ;;  %v2164_v43 = vsub.f32 %v61_v4, %v163_v55  ;;  %v472_v19 = vsub.f32 %v2078_v49, %v2701_v35  ;;  %v479_v31 = vsub.f32 %v2080_v53, %v2700_v56  ;;  %v115_v36 = vand.u32 4294901760, %v45_v13 }
  0x28   :  { %2797 = vst [vmem:[#allocation12_spill] sm:$0xff] %v2160_v54  ;;  %2798 = vst [vmem:[#allocation13_spill] sm:$0xff] %v2162_v37  ;;  %v1722_v12 = vpack.c.bf16 %v354_v58, %v347_v34  ;;  %1701 = vmatprep.subr.bf16.mxu0 %v2160_v54  ;;  %v2179_v55 = vsub.f32 %v44_v57, %v112_v60  ;;  %v2708_v4 = vand.u32 4294901760, %v2095_v59  ;;  %v2706_v5 = vand.u32 4294901760, %v2104_v25 }
  0x29   :  { %2799 = vst [vmem:[#allocation14_spill] sm:$0xff] %v2164_v43  ;;  %v473_v24 = vand.u32 4294901760, %v472_v19  ;;  %v480_v56 = vand.u32 4294901760, %v479_v31  ;;  %v2183_v35 = vpack.c.bf16 %v115_v36, %v112_v60  ;;  %v2185_v44 = vsub.f32 %v45_v13, %v115_v36 }
  0x2a   :  { %2800 = vst [vmem:[#allocation15_spill] sm:$0xff] %v2179_v55  ;;  %1723 = vmatpush3.bf16.msra.mxu1 %v1722_v12  ;;  %v360_v42 = vsub.f32 %v2095_v59, %v2708_v4  ;;  %v367_v58 = vsub.f32 %v2104_v25, %v2706_v5  ;;  %v2193_v57 = vand.u32 4294901760, %v15_v8  ;;  %v2195_v34 = vand.u32 4294901760, %v14_v3 }
  0x2b   :  { %2801 = vst [vmem:[#allocation16_spill] sm:$0xff] %v2183_v35  ;;  %2802 = vst [vmem:[#allocation17_spill] sm:$0xff] %v2185_v44  ;;  %v1724_v54 = vpack.c.bf16 %v480_v56, %v473_v24  ;;  %1703 = vmatpush3.bf16.msra.mxu0 %v2183_v35  ;;  %v2707_v60 = vand.u32 4294901760, %v2120_v38  ;;  %v2709_v36 = vand.u32 4294901760, %v2122_v9  ;;  %v1736_v13 = vpack.c.bf16 %v1944_v33, %v1942_v32 }
  0x2c   :  { %2803 = vst [vmem:[#allocation18_spill] sm:$0xff] %v2193_v57  ;;  %2804 = vst [vmem:[#allocation19_spill] sm:$0xff] %v2195_v34  ;;  %v361_v19 = vand.u32 4294901760, %v360_v42  ;;  %v368_v31 = vand.u32 4294901760, %v367_v58  ;;  %v2203_v12 = vsub.f32 %v15_v8, %v2193_v57  ;;  %v2206_v5 = vsub.f32 %v14_v3, %v2195_v34  ;;  %511 = vmatprep.mubr.f32.mxu1 %v2193_v57  ;;  %v17_v3 = vld [vmem:[%s2679_s0 + $0x18] sm:$0xff] }
  0x2d   :  { %1725 = vmatprep.subr.bf16.mxu1 %v1724_v54  ;;  %v486_v56 = vsub.f32 %v2120_v38, %v2707_v60  ;;  %v493_v24 = vsub.f32 %v2122_v9, %v2709_v36  ;;  %1737 = vmatprep.subr.bf16.mxu0 %v1736_v13  ;;  %v16_v54 = vld [vmem:[%s2679_s0 + $0x10] sm:$0xff]  ;;  %v1738_v13 = vpack.c.bf16 %v1920_v21, %v1910_v15  ;;  %v2807_v8 = vand.u32 4294901760, %v2137_v2 }
  0x2e   :  { %2805 = vst [vmem:[#allocation20_spill] sm:$0xff] %v2203_v12  ;;  %2806 = vst [vmem:[#allocation21_spill] sm:$0xff] %v2206_v5  ;;  %v1726_v58 = vpack.c.bf16 %v368_v31, %v361_v19  ;;  %v2724_v60 = vand.u32 4294901760, %v2203_v12  ;;  %v2725_v4 = vand.u32 4294901760, %v2206_v5  ;;  %v2808_v35 = vand.u32 4294901760, %v2146_v10 }
  0x2f   :  { %v487_v36 = vand.u32 4294901760, %v486_v56  ;;  %v494_v42 = vand.u32 4294901760, %v493_v24  ;;  %v374_v57 = vsub.f32 %v2137_v2, %v2807_v8  ;;  %v2239_v1 = vand.u32 4294901760, %v17_v3 }
  0x30   :  { %v381_v11 = vsub.f32 %v2146_v10, %v2808_v35  ;;  %1727 = vmatpush3.bf16.msra.mxu1 %v1726_v58  ;;  %v168_v19 = vsub.f32 %v2203_v12, %v2724_v60  ;;  %v174_v31 = vsub.f32 %v2206_v5, %v2725_v4  ;;  %v2241_v56 = vand.u32 4294901760, %v16_v54  ;;  %v19_v4 = vld [vmem:[%s2679_s0 + $0x28] sm:$0xff] }
  0x31   :  { %2809 = vst [vmem:[#allocation22_spill] sm:$0xff] %v2239_v1  ;;  %v1728_v24 = vpack.c.bf16 %v494_v42, %v487_v36  ;;  %v375_v30 = vand.u32 4294901760, %v374_v57  ;;  %v2728_v48 = vand.u32 4294901760, %v2162_v37  ;;  %v2245_v58 = vsub.f32 %v17_v3, %v2239_v1 }
  0x32   :  { %2810 = vst [vmem:[#allocation23_spill] sm:$0xff] %v2241_v56  ;;  %v382_v8 = vand.u32 4294901760, %v381_v11  ;;  %v169_v6 = vand.u32 4294901760, %v168_v19  ;;  %v175_v35 = vand.u32 4294901760, %v174_v31  ;;  %v2248_v60 = vsub.f32 %v16_v54, %v2241_v56 }
  0x33   :  { %2811 = vst [vmem:[#allocation24_spill] sm:$0xff] %v2245_v58  ;;  %1729 = vmatprep.subr.bf16.mxu1 %v1728_v24  ;;  %v500_v11 = vsub.f32 %v2162_v37, %v2728_v48  ;;  %v2729_v57 = vand.u32 4294901760, %v2164_v43  ;;  %v1740_v36 = vpack.c.bf16 %v1933_v26, %v1924_v23  ;;  %v2732_v42 = vand.u32 4294901760, %v2245_v58 }
  0x34   :  { %2812 = vst [vmem:[#allocation25_spill] sm:$0xff] %v2248_v60  ;;  %v1730_v5 = vpack.c.bf16 %v382_v8, %v375_v30  ;;  %170 = vmatprep.mubr.f32.mxu0 %v169_v6  ;;  %v2733_v3 = vand.u32 4294901760, %v2248_v60  ;;  %v2734_v54 = vand.u32 4294901760, %v2179_v55  ;;  %v2737_v19 = vand.u32 4294901760, %v2185_v44  ;;  %v18_v30 = vld [vmem:[%s2679_s0 + $0x20] sm:$0xff] }
  0x35   :  { %176 = vmatmul.mubr.f32.vlgmr.msra.gmra.mrb[0].mxu0 %v175_v35  ;;  %v501_v31 = vand.u32 4294901760, %v500_v11  ;;  %v507_v24 = vsub.f32 %v2164_v43, %v2729_v57  ;;  %v1742_v6 = vpack.c.bf16 %v1939_v29, %v1937_v28  ;;  %v2271_v8 = vand.u32 4294901760, %v19_v4 }
  0x36   :  { %1731 = vmatpush3.bf16.msra.mxu1 %v1730_v5  ;;  %1739 = vmatpush3.bf16.msra.mxu0 %v1738_v13  ;;  %v183_v48 = vsub.f32 %v2245_v58, %v2732_v42  ;;  %v189_v35 = vsub.f32 %v2248_v60, %v2733_v3  ;;  %v388_v5 = vsub.f32 %v2179_v55, %v2734_v54  ;;  %v2288_v12 = vand.u32 4294901760, %v18_v30  ;;  %v21_v3 = vld [vmem:[%s2679_s0 + $0x38] sm:$0xff]  ;;  %v20_v54 = vld [vmem:[%s2679_s0 + $0x30] sm:$0xff] }
  0x37   :  { %2813 = vst [vmem:[#allocation26_spill] sm:$0xff] %v2271_v8  ;;  %v395_v11 = vsub.f32 %v2185_v44, %v2737_v19  ;;  %v508_v57 = vand.u32 4294901760, %v507_v24  ;;  %1741 = vmatprep.subr.bf16.mxu0 %v1740_v36  ;;  %v2286_v13 = vsub.f32 %v19_v4, %v2271_v8  ;;  %v1744_v42 = vpack.c.bf16 %v1956_v41, %v1954_v40  ;;  %v23_v4 = vld [vmem:[%s2679_s0 + $0x48] sm:$0xff] }
  0x38   :  { %2815 = vst [vmem:[#allocation28_spill] sm:$0xff] %v2288_v12  ;;  %v184_v60 = vand.u32 4294901760, %v183_v48  ;;  %v190_v19 = vand.u32 4294901760, %v189_v35  ;;  %v389_v24 = vand.u32 4294901760, %v388_v5  ;;  %v2303_v55 = vsub.f32 %v18_v30, %v2288_v12 }
  0x39   :  { %2814 = vst [vmem:[#allocation27_spill] sm:$0xff] %v2286_v13  ;;  %v396_v36 = vand.u32 4294901760, %v395_v11  ;;  %v1732_v58 = vpack.c.bf16 %v508_v57, %v501_v31  ;;  %v2748_v44 = vand.u32 4294901760, %v2286_v13  ;;  %v1746_v48 = vpack.c.bf16 %v1967_v47, %v1965_v46 }
  0x3a   :  { %2816 = vst [vmem:[#allocation29_spill] sm:$0xff] %v2303_v55  ;;  %185 = vmatprep.mubr.f32.mxu0 %v184_v60  ;;  %1743 = vmatpush3.bf16.msra.mxu0 %v1742_v6  ;;  %v2310_v35 = vand.u32 4294901760, %v21_v3  ;;  %v2312_v5 = vand.u32 4294901760, %v20_v54  ;;  %v2751_v30 = vand.u32 4294901760, %v2303_v55  ;;  %v2318_v31 = vand.u32 4294901760, %v23_v4  ;;  %v25_v60 = vld [vmem:[%s2679_s0 + $0x58] sm:$0xff] }
  0x3b   :  { %v1734_v16 = vpack.c.bf16 %v396_v36, %v389_v24  ;;  %191 = vmatmul.mubr.f32.gmra.mrb[2].mxu0 %v190_v19  ;;  %1733 = vmatprep.subr.bf16.mxu1 %v1732_v58  ;;  %v198_v57 = vsub.f32 %v2286_v13, %v2748_v44  ;;  %v1748_v58 = vpack.c.bf16 %v1995_v0, %v1991_v61  ;;  %v2331_v11 = vand.u32 4294901760, %v22_v50  ;;  %v24_v24 = vld [vmem:[%s2679_s0 + $0x50] sm:$0xff] }
  0x3c   :  { %2817 = vst [vmem:[#allocation30_spill] sm:$0xff] %v2310_v35  ;;  %1745 = vmatprep.subr.bf16.mxu0 %v1744_v42  ;;  %v2324_v6 = vsub.f32 %v21_v3, %v2310_v35  ;;  %v2327_v19 = vsub.f32 %v20_v54, %v2312_v5  ;;  %v1750_v42 = vpack.c.bf16 %v2020_v18, %v2018_v17  ;;  %v2359_v54 = vand.u32 4294901760, %v24_v24 }
  0x3d   :  { %1735 = vmatpush3.bf16.msra.mxu1 %v1734_v16  ;;  %v199_v36 = vand.u32 4294901760, %v198_v57  ;;  %v204_v16 = vsub.f32 %v2303_v55, %v2751_v30  ;;  %v2343_v3 = vsub.f32 %v23_v4, %v2318_v31  ;;  %v2348_v13 = vsub.f32 %v22_v50, %v2331_v11  ;;  %v27_v30 = vld [vmem:[%s2679_s0 + $0x68] sm:$0xff] }
  0x3e   :  { %2818 = vst [vmem:[#allocation31_spill] sm:$0xff] %v2324_v6  ;;  %2819 = vst [vmem:[#allocation32_spill] sm:$0xff] %v2327_v19  ;;  %1769 = vmatprep.subr.bf16.mxu1 %v1908_v14  ;;  %1747 = vmatpush3.bf16.msra.mxu0 %v1746_v48  ;;  %v2350_v57 = vand.u32 4294901760, %v25_v60  ;;  %v1752_v48 = vpack.c.bf16 %v2038_v52, %v2036_v51  ;;  %v2822_v50 = vand.u32 4294901760, %v2324_v6  ;;  %v26_v14 = vld [vmem:[%s2679_s0 + $0x60] sm:$0xff] }
  0x3f   :  { %2820 = vst [vmem:[#allocation33_spill] sm:$0xff] %v2343_v3  ;;  %2821 = vst [vmem:[#allocation34_spill] sm:$0xff] %v2348_v13  ;;  %200 = vmatprep.mubr.f32.mxu0 %v199_v36  ;;  %v205_v55 = vand.u32 4294901760, %v204_v16  ;;  %v2823_v36 = vand.u32 4294901760, %v2327_v19  ;;  %1749 = vmatprep.subr.bf16.mxu0 %v1748_v58 }
  0x40   :  { %513 = vmatmul.mubr.f32.vlgmr.msra.gmra.mrb[0].mxu1 %v2195_v34  ;;  %v213_v44 = vsub.f32 %v2324_v6, %v2822_v50  ;;  %v2371_v4 = vsub.f32 %v25_v60, %v2350_v57  ;;  %v2384_v34 = vand.u32 4294901760, %v27_v30 }
  0x41   :  { %1771 = vmatpush3.bf16.msra.mxu1 %v1918_v20  ;;  %518 = vmatprep.mubr.f32.mxu1 %v2239_v1  ;;  %v219_v16 = vsub.f32 %v2327_v19, %v2823_v36  ;;  %v2825_v20 = vand.u32 4294901760, %v2343_v3  ;;  %v1754_v1 = vpack.c.bf16 %v2062_v7, %v2053_v62  ;;  %v2382_v36 = vsub.f32 %v24_v24, %v2359_v54 }
  0x42   :  { %2824 = vst [vmem:[#allocation35_spill] sm:$0xff] %v2371_v4  ;;  %206 = vmatmul.mubr.f32.gmra.mrb[4].mxu0 %v205_v55  ;;  %v214_v60 = vand.u32 4294901760, %v213_v44  ;;  %1773 = vmatprep.subr.bf16.mxu1 %v1922_v22  ;;  %v2827_v55 = vand.u32 4294901760, %v2348_v13 }
  0x43   :  { %v228_v50 = vsub.f32 %v2343_v3, %v2825_v20  ;;  %2826 = vst [vmem:[#allocation36_spill] sm:$0xff] %v2382_v36  ;;  %v220_v19 = vand.u32 4294901760, %v219_v16  ;;  %1751 = vmatpush3.bf16.msra.mxu0 %v1750_v42  ;;  %v29_v20 = vld [vmem:[%s2679_s0 + $0x78] sm:$0xff]  ;;  %v2774_v44 = vand.u32 4294901760, %v2382_v36  ;;  %v2397_v16 = vsub.f32 %v27_v30, %v2384_v34 }
  0x44   :  { %v234_v58 = vsub.f32 %v2348_v13, %v2827_v55  ;;  %520 = vmatmul.mubr.f32.gmra.mrb[2].mxu1 %v2241_v56  ;;  %1753 = vmatprep.subr.bf16.mxu0 %v1752_v48  ;;  %v2399_v42 = vand.u32 4294901760, %v26_v14  ;;  %v28_v55 = vld [vmem:[%s2679_s0 + $0x70] sm:$0xff]  ;;  %v2829_v13 = vand.u32 4294901760, %v2371_v4  ;;  %v1756_v48 = vpack.c.bf16 %v2080_v53, %v2078_v49 }
  0x45   :  { %v229_v24 = vand.u32 4294901760, %v228_v50  ;;  %2828 = vst [vmem:[#allocation37_spill] sm:$0xff] %v2397_v16  ;;  %215 = vmatprep.mubr.f32.mxu0 %v214_v60  ;;  %1775 = vmatpush3.bf16.msra.mxu1 %v1935_v27  ;;  %v1758_v30 = vpack.c.bf16 %v2104_v25, %v2095_v59  ;;  %v249_v60 = vsub.f32 %v2382_v36, %v2774_v44  ;;  %v2779_v56 = vand.u32 4294901760, %v2397_v16 }
  0x46   :  { %v235_v6 = vand.u32 4294901760, %v234_v58  ;;  %v243_v50 = vsub.f32 %v2371_v4, %v2829_v13  ;;  %221 = vmatmul.mubr.f32.gmra.mrb[6].mxu0 %v220_v19  ;;  %525 = vmatprep.mubr.f32.mxu1 %v2271_v8  ;;  %v2418_v58 = vsub.f32 %v26_v14, %v2399_v42  ;;  %v2420_v3 = vand.u32 4294901760, %v29_v20 }
  0x47   :  { %230 = vmatprep.mubr.f32.mxu0 %v229_v24  ;;  %1777 = vmatprep.subr.bf16.mxu1 %v1952_v39  ;;  %v1760_v19 = vpack.c.bf16 %v2122_v9, %v2120_v38  ;;  %v1762_v8 = vpack.c.bf16 %v2146_v10, %v2137_v2  ;;  %v2427_v4 = vand.u32 4294901760, %v28_v55  ;;  %v258_v14 = vsub.f32 %v2397_v16, %v2779_v56 }
  0x48   :  { %v244_v13 = vand.u32 4294901760, %v243_v50  ;;  %527 = vmatmul.mubr.f32.gmra.mrb[4].mxu1 %v2288_v12  ;;  %1755 = vmatpush3.bf16.msra.mxu0 %v1754_v1  ;;  %v2435_v44 = vsub.f32 %v29_v20, %v2420_v3  ;;  %v1764_v50 = vpack.c.bf16 %v2164_v43, %v2162_v37  ;;  %v250_v36 = vand.u32 4294901760, %v249_v60 }
  0x49   :  { %1779 = vmatpush3.bf16.msra.mxu1 %v1963_v45  ;;  %532 = vmatprep.mubr.f32.mxu1 %v2310_v35  ;;  %v2442_v12 = vsub.f32 %v28_v55, %v2427_v4  ;;  %v2830_v1 = vand.u32 4294901760, %v1942_v32  ;;  %v2831_v56 = vand.u32 4294901760, %v1944_v33  ;;  %v2832_v24 = vand.u32 4294901760, %v1910_v15 }
  0x4a   :  { %v2833_v20 = vand.u32 4294901760, %v1920_v21  ;;  %236 = vmatmul.mubr.f32.gmra.mrb[8].mxu0 %v235_v6  ;;  %1757 = vmatprep.subr.bf16.mxu0 %v1756_v48  ;;  %v259_v43 = vand.u32 4294901760, %v258_v14  ;;  %v2834_v37 = vand.u32 4294901760, %v2418_v58  ;;  %v272_v55 = vand.u32 4294901760, %v2435_v44 }
  0x4b   :  { %v1800_v16 = vpack.c.bf16 %v2831_v56, %v2830_v1  ;;  %v2835_v35 = vand.u32 4294901760, %v1924_v23  ;;  %v2836_v32 = vand.u32 4294901760, %v1933_v26  ;;  %245 = vmatprep.mubr.f32.mxu0 %v244_v13  ;;  %1781 = vmatprep.subr.bf16.mxu1 %v1993_v63  ;;  %v278_v15 = vand.u32 4294901760, %v2442_v12  ;;  %v2847_v1 = vld [vmem:[#allocation5_spill] sm:$0xff] }
  0x4c   :  { %v1802_v39 = vpack.c.bf16 %v2833_v20, %v2832_v24  ;;  %v264_v60 = vsub.f32 %v2418_v58, %v2834_v37  ;;  %v2837_v21 = vand.u32 4294901760, %v1937_v28  ;;  %v2838_v56 = vand.u32 4294901760, %v1939_v29  ;;  %534 = vmatmul.mubr.f32.gmra.mrb[6].mxu1 %v2312_v5  ;;  %1759 = vmatpush3.bf16.msra.mxu0 %v1758_v30 }
  0x4d   :  { %v1804_v33 = vpack.c.bf16 %v2836_v32, %v2835_v35  ;;  %v2839_v48 = vand.u32 4294901760, %v1954_v40  ;;  %v2840_v37 = vand.u32 4294901760, %v1956_v41  ;;  %v2841_v23 = vand.u32 4294901760, %v1965_v46  ;;  %1783 = vmatpush3.bf16.msra.mxu1 %v2847_v1  ;;  %539 = vmatprep.mubr.f32.mxu1 %v2318_v31 }
  0x4e   :  { %v1806_v6 = vpack.c.bf16 %v2838_v56, %v2837_v21  ;;  %v2842_v26 = vand.u32 4294901760, %v1967_v47  ;;  %v273_v28 = vsub.f32 %v2435_v44, %v272_v55  ;;  %v2843_v29 = vand.u32 4294901760, %v1991_v61  ;;  %251 = vmatmul.mubr.f32.gmra.mrb[10].mxu0 %v250_v36  ;;  %1761 = vmatprep.subr.bf16.mxu0 %v1760_v19  ;;  %v2858_v36 = vld [vmem:[#allocation6_spill] sm:$0xff] }
  0x4f   :  { %v1808_v14 = vpack.c.bf16 %v2840_v37, %v2839_v48  ;;  %v2844_v13 = vand.u32 4294901760, %v1995_v0  ;;  %v2845_v41 = vand.u32 4294901760, %v2018_v17  ;;  %v2846_v24 = vand.u32 4294901760, %v2020_v18  ;;  %260 = vmatprep.mubr.f32.mxu0 %v259_v43  ;;  %1785 = vmatprep.subr.bf16.mxu1 %v2858_v36  ;;  %v2864_v43 = vld [vmem:[#allocation8_spill] sm:$0xff] }
  0x50   :  { %v1810_v35 = vpack.c.bf16 %v2842_v26, %v2841_v23  ;;  %v279_v47 = vsub.f32 %v2442_v12, %v278_v15  ;;  %v2848_v30 = vand.u32 4294901760, %v2036_v51  ;;  %v2849_v61 = vand.u32 4294901760, %v2038_v52  ;;  %541 = vmatmul.mubr.f32.gmra.mrb[8].mxu1 %v2331_v11  ;;  %1763 = vmatpush3.bf16.msra.mxu0 %v1762_v8  ;;  %v2863_v26 = vld [vmem:[#allocation7_spill] sm:$0xff]  ;;  %v2867_v8 = vld [vmem:[#allocation20_spill] sm:$0xff] }
  0x51   :  { %v1812_v40 = vpack.c.bf16 %v2844_v13, %v2843_v29  ;;  %v1814_v46 = vpack.c.bf16 %v2846_v24, %v2845_v41  ;;  %v2850_v0 = vand.u32 4294901760, %v2053_v62  ;;  %v2851_v17 = vand.u32 4294901760, %v2062_v7  ;;  %1787 = vmatpush3.bf16.msra.mxu1 %v2863_v26  ;;  %546 = vmatprep.mubr.f32.mxu1 %v2350_v57  ;;  %v2870_v29 = vld [vmem:[#allocation12_spill] sm:$0xff]  ;;  %v2874_v24 = vld [vmem:[#allocation25_spill] sm:$0xff] }
  0x52   :  { %v1816_v20 = vpack.c.bf16 %v2849_v61, %v2848_v30  ;;  %v265_v18 = vand.u32 4294901760, %v264_v60  ;;  %v2852_v21 = vand.u32 4294901760, %v2078_v49  ;;  %v2853_v56 = vand.u32 4294901760, %v2080_v53  ;;  %1765 = vmatprep.subr.bf16.mxu0 %v1764_v50  ;;  %1789 = vmatprep.subr.bf16.mxu1 %v2864_v43  ;;  %v2869_v50 = vld [vmem:[#allocation21_spill] sm:$0xff]  ;;  %v2871_v13 = vld [vmem:[#allocation24_spill] sm:$0xff]  ;;  %v2876_v30 = vld [vmem:[#allocation27_spill] sm:$0xff] }
  0x53   :  { %v2499_v32 = vpack.c.bf16 %v2851_v17, %v2850_v0  ;;  %v2854_v51 = vand.u32 4294901760, %v2095_v59  ;;  %v2855_v52 = vand.u32 4294901760, %v2104_v25  ;;  %v2856_v62 = vand.u32 4294901760, %v2120_v38  ;;  %v2861_v25 = vld [vmem:[#allocation15_spill] sm:$0xff]  ;;  %v2862_v59 = vld [vmem:[#allocation17_spill] sm:$0xff]  ;;  %v2872_v41 = vld [vmem:[#allocation16_spill] sm:$0xff] }
  0x54   :  { %v2505_v48 = vpack.c.bf16 %v2853_v56, %v2852_v21  ;;  %v2857_v7 = vand.u32 4294901760, %v2122_v9  ;;  %v274_v49 = vand.u32 4294901760, %v273_v28  ;;  %v2859_v53 = vand.u32 4294901760, %v2137_v2  ;;  %266 = vmatmul.mubr.f32.gmra.mrb[12].mxu0 %v265_v18  ;;  %548 = vmatmul.mubr.f32.gmra.mrb[10].mxu1 %v2359_v54  ;;  %v2866_v2 = vld [vmem:[#allocation10_spill] sm:$0xff]  ;;  %v2868_v28 = vld [vmem:[#allocation11_spill] sm:$0xff]  ;;  %v2880_v0 = vld [vmem:[#allocation29_spill] sm:$0xff] }
  0x55   :  { %v2511_v37 = vpack.c.bf16 %v2855_v52, %v2854_v51  ;;  %v2860_v19 = vand.u32 4294901760, %v2146_v10  ;;  %v1766_v38 = vpack.c.bf16 %v2862_v59, %v2861_v25  ;;  %v280_v9 = vand.u32 4294901760, %v279_v47  ;;  %v2865_v10 = vld [vmem:[#allocation9_spill] sm:$0xff]  ;;  %553 = vmatprep.mubr.f32.mxu1 %v2384_v34  ;;  %v2875_v47 = vld [vmem:[#allocation2_spill] sm:$0xff]  ;;  %v2881_v17 = vld [vmem:[#allocation31_spill] sm:$0xff] }
  0x56   :  { %v2517_v23 = vpack.c.bf16 %v2857_v7, %v2856_v62  ;;  %275 = vmatprep.mubr.f32.mxu0 %v274_v49  ;;  %1791 = vmatpush3.bf16.msra.mxu1 %v2865_v10  ;;  %v2877_v61 = vand.u32 4294901760, %v2869_v50  ;;  %v2884_v18 = vld [vmem:[#allocation32_spill] sm:$0xff]  ;;  %v2886_v56 = vld [vmem:[#allocation33_spill] sm:$0xff]  ;;  %v2898_v52 = vld [vmem:[#allocation14_spill] sm:$0xff] }
  0x57   :  { %v2524_v60 = vpack.c.bf16 %v2860_v19, %v2859_v53  ;;  %1767 = vmatpush3.bf16.msra.mxu0 %v1766_v38  ;;  %1793 = vmatprep.subr.bf16.mxu1 %v2866_v2  ;;  %v2885_v21 = vld [vmem:[#allocation4_spill] sm:$0xff]  ;;  %v2896_v51 = vld [vmem:[#allocation13_spill] sm:$0xff]  ;;  %v2905_v19 = vld [vmem:[#allocation18_spill] sm:$0xff] }
  0x58   :  { %281 = vmatmul.mubr.f32.gmra.mrb[14].mxu0 %v280_v9  ;;  %1801 = vmatprep.subr.bf16.mxu0 %v1800_v16  ;;  %v2873_v16 = vand.u32 4294901760, %v2867_v8  ;;  %v2910_v38 = vld [vmem:[#allocation26_spill] sm:$0xff] }
  0x59   :  { %697 = vmatprep.mubr.f32.mxu0 %v2867_v8  ;;  %555 = vmatmul.mubr.f32.gmra.mrb[12].mxu1 %v2399_v42 }
  0x5a   :  { %1795 = vmatpush3.bf16.msra.mxu1 %v2868_v28  ;;  %560 = vmatprep.mubr.f32.mxu1 %v2420_v3 }
  0x5b   :  { %1797 = vmatprep.subr.bf16.mxu1 %v2870_v29 }
  0x5c   :  { %700 = vmatmul.mubr.f32.vlgmr.msra.gmra.mrb[16].mxu0 %v2869_v50 }
  0x5d   :  { %1803 = vmatpush3.bf16.msra.mxu0 %v1802_v39  ;;  %706 = vmatprep.mubr.f32.mxu0 %v2871_v13  ;;  %v2878_v39 = vld [vmem:[#allocation3_spill] sm:$0xff] }
  0x5e   :  { %562 = vmatmul.mubr.f32.gmra.mrb[14].mxu1 %v2427_v4  ;;  %1805 = vmatprep.subr.bf16.mxu0 %v1804_v33  ;;  %v2879_v33 = vand.u32 4294901760, %v2871_v13 }
  0x5f   :  { %1799 = vmatpush3.bf16.msra.mxu1 %v2872_v41  ;;  %867 = vmatprep.mubr.f32.mxu1 %v2873_v16 }
  0x60   :  { %709 = vmatmul.mubr.f32.gmra.mrb[18].mxu0 %v2874_v24  ;;  %1833 = vmatprep.subr.bf16.mxu1 %v2875_v47 }
  0x61   :  { %1807 = vmatpush3.bf16.msra.mxu0 %v1806_v6  ;;  %715 = vmatprep.mubr.f32.mxu0 %v2876_v30  ;;  %v2882_v6 = vand.u32 4294901760, %v2874_v24 }
  0x62   :  { %871 = vmatmul.mubr.f32.vlgmr.msra.gmra.mrb[16].mxu1 %v2877_v61  ;;  %1809 = vmatprep.subr.bf16.mxu0 %v1808_v14  ;;  %v2883_v14 = vand.u32 4294901760, %v2876_v30 }
  0x63   :  { %1835 = vmatpush3.bf16.msra.mxu1 %v2878_v39  ;;  %878 = vmatprep.mubr.f32.mxu1 %v2879_v33 }
  0x64   :  { %718 = vmatmul.mubr.f32.gmra.mrb[20].mxu0 %v2880_v0  ;;  %1837 = vmatprep.subr.bf16.mxu1 %v1922_v22  ;;  %v2887_v22 = vand.u32 4294901760, %v2880_v0 }
  0x65   :  { %1811 = vmatpush3.bf16.msra.mxu0 %v1810_v35  ;;  %724 = vmatprep.mubr.f32.mxu0 %v2881_v17  ;;  %v2888_v35 = vand.u32 4294901760, %v2881_v17 }
  0x66   :  { %882 = vmatmul.mubr.f32.gmra.mrb[18].mxu1 %v2882_v6  ;;  %1813 = vmatprep.subr.bf16.mxu0 %v1812_v40  ;;  %v2890_v40 = vld [vmem:[#allocation35_spill] sm:$0xff] }
  0x67   :  { %1839 = vmatpush3.bf16.msra.mxu1 %v1935_v27  ;;  %889 = vmatprep.mubr.f32.mxu1 %v2883_v14  ;;  %v2889_v27 = vld [vmem:[#allocation34_spill] sm:$0xff]  ;;  %v2900_v7 = vand.u32 4294901760, %v2890_v40 }
  0x68   :  { %727 = vmatmul.mubr.f32.gmra.mrb[22].mxu0 %v2884_v18  ;;  %1841 = vmatprep.subr.bf16.mxu1 %v2885_v21 }
  0x69   :  { %1815 = vmatpush3.bf16.msra.mxu0 %v1814_v46  ;;  %733 = vmatprep.mubr.f32.mxu0 %v2886_v56  ;;  %v2891_v46 = vand.u32 4294901760, %v2884_v18 }
  0x6a   :  { %893 = vmatmul.mubr.f32.gmra.mrb[20].mxu1 %v2887_v22  ;;  %1817 = vmatprep.subr.bf16.mxu0 %v1816_v20  ;;  %v2893_v20 = vld [vmem:[#allocation36_spill] sm:$0xff] }
  0x6b   :  { %1843 = vmatpush3.bf16.msra.mxu1 %v1963_v45  ;;  %900 = vmatprep.mubr.f32.mxu1 %v2888_v35  ;;  %v2892_v45 = vand.u32 4294901760, %v2886_v56  ;;  %v2903_v49 = vand.u32 4294901760, %v2893_v20 }
  0x6c   :  { %736 = vmatmul.mubr.f32.gmra.mrb[24].mxu0 %v2889_v27  ;;  %1845 = vmatprep.subr.bf16.mxu1 %v1993_v63  ;;  %v2894_v63 = vld [vmem:[#allocation37_spill] sm:$0xff] }
  0x6d   :  { %1819 = vmatpush3.bf16.msra.mxu0 %v2499_v32  ;;  %742 = vmatprep.mubr.f32.mxu0 %v2890_v40  ;;  %v2895_v32 = vand.u32 4294901760, %v2889_v27  ;;  %v2904_v53 = vand.u32 4294901760, %v2894_v63 }
  0x6e   :  { %904 = vmatmul.mubr.f32.gmra.mrb[22].mxu1 %v2891_v46  ;;  %1821 = vmatprep.subr.bf16.mxu0 %v2505_v48  ;;  %v2897_v48 = vand.u32 4294901760, %v2896_v51 }
  0x6f   :  { %1847 = vmatpush3.bf16.msra.mxu1 %v2847_v1  ;;  %911 = vmatprep.mubr.f32.mxu1 %v2892_v45  ;;  %v2899_v1 = vand.u32 4294901760, %v2898_v52 }
  0x70   :  { %745 = vmatmul.mubr.f32.gmra.mrb[26].mxu0 %v2893_v20  ;;  %1849 = vmatprep.subr.bf16.mxu1 %v2858_v36 }
  0x71   :  { %1823 = vmatpush3.bf16.msra.mxu0 %v2511_v37  ;;  %751 = vmatprep.mubr.f32.mxu0 %v2894_v63  ;;  %v1828_v62 = vpack.c.bf16 %v2899_v1, %v2897_v48  ;;  %v2901_v37 = vand.u32 4294901760, %v2861_v25  ;;  %v2907_v25 = vld [vmem:[#allocation19_spill] sm:$0xff] }
  0x72   :  { %915 = vmatmul.mubr.f32.gmra.mrb[24].mxu1 %v2895_v32  ;;  %1825 = vmatprep.subr.bf16.mxu0 %v2517_v23  ;;  %v2902_v23 = vand.u32 4294901760, %v2862_v59  ;;  %v2908_v59 = vld [vmem:[#allocation22_spill] sm:$0xff] }
  0x73   :  { %1851 = vmatpush3.bf16.msra.mxu1 %v2863_v26  ;;  %922 = vmatprep.mubr.f32.mxu1 %v2900_v7 }
  0x74   :  { %754 = vmatmul.mubr.f32.gmra.mrb[28].mxu0 %v2418_v58  ;;  %1853 = vmatprep.subr.bf16.mxu1 %v2864_v43  ;;  %v1830_v36 = vpack.c.bf16 %v2902_v23, %v2901_v37 }
  0x75   :  { %1827 = vmatpush3.bf16.msra.mxu0 %v2524_v60  ;;  %760 = vmatprep.mubr.f32.mxu0 %v2435_v44  ;;  %v2906_v60 = vand.u32 4294901760, %v2418_v58  ;;  %v2909_v58 = vld [vmem:[#allocation23_spill] sm:$0xff]  ;;  %v2911_v44 = vld [vmem:[#allocation28_spill] sm:$0xff] }
  0x76   :  { %926 = vmatmul.mubr.f32.gmra.mrb[26].mxu1 %v2903_v49  ;;  %1829 = vmatprep.subr.bf16.mxu0 %v1828_v62 }
  0x77   :  { %1855 = vmatpush3.bf16.msra.mxu1 %v2865_v10  ;;  %933 = vmatprep.mubr.f32.mxu1 %v2904_v53 }
  0x78   :  { %763 = vmatmul.mubr.f32.gmra.mrb[30].mxu0 %v2442_v12  ;;  %1857 = vmatprep.subr.bf16.mxu1 %v2866_v2 }
  0x79   :  { %1831 = vmatpush3.bf16.msra.mxu0 %v1830_v36  ;;  %1114 = vmatprep.mubr.f32.mxu0 %v2905_v19 }
  0x7a   :  { %937 = vmatmul.mubr.f32.gmra.mrb[28].mxu1 %v2906_v60 }
  0x7b   :  { %1859 = vmatpush3.bf16.msra.mxu1 %v2868_v28  ;;  %944 = vmatprep.mubr.f32.mxu1 %v272_v55  ;;  %v2912_v55 = vld [vmem:[#allocation30_spill] sm:$0xff] }
  0x7c   :  { %1116 = vmatmul.mubr.f32.vlgmr.msra.gmra.mrb[32].mxu0 %v2907_v25  ;;  %1861 = vmatprep.subr.bf16.mxu1 %v2870_v29 }
  0x7d   :  { %1121 = vmatprep.mubr.f32.mxu0 %v2908_v59 }
  0x7e   :  { %948 = vmatmul.mubr.f32.gmra.mrb[30].mxu1 %v278_v15 }
  0x7f   :  { %1863 = vmatpush3.bf16.msra.mxu1 %v2872_v41  ;;  %1267 = vmatprep.mubr.f32.mxu1 %v2905_v19 }
  0x80   :  { %1123 = vmatmul.mubr.f32.gmra.mrb[34].mxu0 %v2909_v58 }
  0x81   :  { %1128 = vmatprep.mubr.f32.mxu0 %v2910_v38 }
  0x82   :  { %1269 = vmatmul.mubr.f32.vlgmr.msra.gmra.mrb[32].mxu1 %v2907_v25 }
  0x83   :  { %1274 = vmatprep.mubr.f32.mxu1 %v2908_v59 }
  0x84   :  { %1130 = vmatmul.mubr.f32.gmra.mrb[36].mxu0 %v2911_v44 }
  0x85   :  { %1135 = vmatprep.mubr.f32.mxu0 %v2912_v55 }
  0x86   :  { %1276 = vmatmul.mubr.f32.gmra.mrb[34].mxu1 %v2909_v58 }
  0x87   :  { %1281 = vmatprep.mubr.f32.mxu1 %v2910_v38 }
  0x88   :  { %1137 = vmatmul.mubr.f32.gmra.mrb[38].mxu0 %v2312_v5 }
  0x89   :  { %1142 = vmatprep.mubr.f32.mxu0 %v2318_v31 }
  0x8a   :  { %1283 = vmatmul.mubr.f32.gmra.mrb[36].mxu1 %v2911_v44 }
  0x8b   :  { %1288 = vmatprep.mubr.f32.mxu1 %v2912_v55 }
  0x8c   :  { %1144 = vmatmul.mubr.f32.gmra.mrb[40].mxu0 %v2331_v11 }
  0x8d   :  { %1149 = vmatprep.mubr.f32.mxu0 %v2350_v57 }
  0x8e   :  { %1290 = vmatmul.mubr.f32.gmra.mrb[38].mxu1 %v2312_v5 }
  0x8f   :  { %1295 = vmatprep.mubr.f32.mxu1 %v2318_v31 }
  0x90   :  { %1151 = vmatmul.mubr.f32.gmra.mrb[42].mxu0 %v2359_v54 }
  0x91   :  { %1156 = vmatprep.mubr.f32.mxu0 %v2384_v34 }
  0x92   :  { %1297 = vmatmul.mubr.f32.gmra.mrb[40].mxu1 %v2331_v11 }
  0x93   :  { %1302 = vmatprep.mubr.f32.mxu1 %v2350_v57  ;;  %v1335_v57 = vld [vmem:[%s2680_s2] ss:$0 sm:$0xff] }
  0x94   :  { %1158 = vmatmul.mubr.f32.gmra.mrb[44].mxu0 %v2399_v42 }
  0x95   :  { %1163 = vmatprep.mubr.f32.mxu0 %v2420_v3 }
  0x96   :  { %1304 = vmatmul.mubr.f32.gmra.mrb[42].mxu1 %v2359_v54 }
  0x97   :  { %1309 = vmatprep.mubr.f32.mxu1 %v2384_v34 }
  0x98   :  { %1165 = vmatmul.mubr.f32.gmra.mrb[46].mxu0 %v2427_v4 }
  0x9a   :  { %1311 = vmatmul.mubr.f32.gmra.mrb[44].mxu1 %v2399_v42 }
  0x9b   :  { %1316 = vmatprep.mubr.f32.mxu1 %v2420_v3 }
  0x9e   :  { %1318 = vmatmul.mubr.f32.gmra.mrb[46].mxu1 %v2427_v4 }
 0x108   :  { %v1368_v12 = vpop.f32.mrb[0].mxu0 }
 0x109   :  { %v1369_v5 = vpop.f32.mrb[1].mxu0 }
 0x10a   :  { %v1370_v31 = vadd.f32 %v1369_v5, %v1368_v12 }
 0x10c   :  { %v178_v26 = vadd.f32 %v1370_v31, %v1335_v57 }
 0x10e   :  { %v1371_v11 = vpop.f32.mrb[2].mxu0 }
 0x10f   :  { %v1372_v15 = vpop.f32.mrb[3].mxu0 }
 0x110   :  { %v1373_v54 = vadd.f32 %v1372_v15, %v1371_v11 }
 0x112   :  { %v193_v3 = vadd.f32 %v1373_v54, %v1335_v57 }
 0x113   :  { %v1424_v34 = vpop.f32.mrb[0].mxu1 }
 0x114   :  { %v1425_v9 = vpop.f32.mrb[1].mxu1 }
 0x115   :  { %v1426_v43 = vadd.f32 %v1425_v9, %v1424_v34  ;;  %v1374_v10 = vpop.f32.mrb[4].mxu0 }
 0x116   :  { %v1375_v42 = vpop.f32.mrb[5].mxu0 }
 0x117   :  { %v515_v2 = vadd.f32 %v1426_v43, %v178_v26  ;;  %v1427_v8 = vpop.f32.mrb[2].mxu1  ;;  %v1376_v4 = vadd.f32 %v1375_v42, %v1374_v10 }
 0x118   :  { %v1428_v28 = vpop.f32.mrb[3].mxu1 }
 0x119   :  { %v1429_v50 = vadd.f32 %v1428_v28, %v1427_v8  ;;  %v1377_v29 = vpop.f32.mrb[6].mxu0  ;;  %v208_v16 = vadd.f32 %v1376_v4, %v1335_v57 }
 0x11a   :  { %v1378_v13 = vpop.f32.mrb[7].mxu0 }
 0x11b   :  { %v522_v41 = vadd.f32 %v1429_v50, %v193_v3  ;;  %v1430_v24 = vpop.f32.mrb[4].mxu1  ;;  %v1379_v47 = vadd.f32 %v1378_v13, %v1377_v29 }
 0x11c   :  { %v1431_v30 = vpop.f32.mrb[5].mxu1 }
 0x11d   :  { %v1432_v61 = vadd.f32 %v1431_v30, %v1430_v24  ;;  %v1380_v39 = vpop.f32.mrb[8].mxu0  ;;  %v223_v17 = vadd.f32 %v1379_v47, %v1335_v57 }
 0x11e   :  { %v1381_v33 = vpop.f32.mrb[9].mxu0 }
 0x11f   :  { %v529_v0 = vadd.f32 %v1432_v61, %v208_v16  ;;  %v1433_v6 = vpop.f32.mrb[6].mxu1  ;;  %v1382_v14 = vadd.f32 %v1381_v33, %v1380_v39 }
 0x120   :  { %v1434_v18 = vpop.f32.mrb[7].mxu1 }
 0x121   :  { %v1435_v21 = vadd.f32 %v1434_v18, %v1433_v6  ;;  %v1383_v56 = vpop.f32.mrb[10].mxu0  ;;  %v238_v27 = vadd.f32 %v1382_v14, %v1335_v57 }
 0x122   :  { %v1384_v22 = vpop.f32.mrb[11].mxu0 }
 0x123   :  { %v536_v35 = vadd.f32 %v1435_v21, %v223_v17  ;;  %v1436_v40 = vpop.f32.mrb[8].mxu1  ;;  %v1385_v46 = vadd.f32 %v1384_v22, %v1383_v56 }
 0x124   :  { %v1437_v45 = vpop.f32.mrb[9].mxu1 }
 0x125   :  { %v1438_v20 = vadd.f32 %v1437_v45, %v1436_v40  ;;  %v253_v48 = vadd.f32 %v1385_v46, %v1335_v57 }
 0x127   :  { %v1386_v63 = vpop.f32.mrb[12].mxu0  ;;  %v543_v51 = vadd.f32 %v1438_v20, %v238_v27  ;;  %v1439_v52 = vpop.f32.mrb[10].mxu1 }
 0x128   :  { %v1387_v32 = vpop.f32.mrb[13].mxu0  ;;  %v1440_v62 = vpop.f32.mrb[11].mxu1 }
 0x129   :  { %v1388_v1 = vadd.f32 %v1387_v32, %v1386_v63  ;;  %v1441_v7 = vadd.f32 %v1440_v62, %v1439_v52 }
 0x12b   :  { %v1389_v37 = vpop.f32.mrb[14].mxu0  ;;  %v268_v36 = vadd.f32 %v1388_v1, %v1335_v57  ;;  %v550_v49 = vadd.f32 %v1441_v7, %v253_v48 }
 0x12c   :  { %v1390_v23 = vpop.f32.mrb[15].mxu0  ;;  %v1442_v19 = vpop.f32.mrb[12].mxu1 }
 0x12d   :  { %v1391_v53 = vadd.f32 %v1390_v23, %v1389_v37  ;;  %v1443_v60 = vpop.f32.mrb[13].mxu1 }
 0x12e   :  { %v1444_v59 = vadd.f32 %v1443_v60, %v1442_v19 }
 0x12f   :  { %v1480_v25 = vpop.f32.mrb[16].mxu0  ;;  %v283_v38 = vadd.f32 %v1391_v53, %v1335_v57 }
 0x130   :  { %v1481_v58 = vpop.f32.mrb[17].mxu0  ;;  %v557_v44 = vadd.f32 %v1444_v59, %v268_v36 }
 0x131   :  { %v1482_v55 = vadd.f32 %v1481_v58, %v1480_v25  ;;  %v1445_v12 = vpop.f32.mrb[14].mxu1 }
 0x132   :  { %v1446_v5 = vpop.f32.mrb[15].mxu1 }
 0x133   :  { %v702_v31 = vadd.f32 %v1482_v55, %v515_v2  ;;  %v1483_v11 = vpop.f32.mrb[18].mxu0  ;;  %v1447_v15 = vadd.f32 %v1446_v5, %v1445_v12 }
 0x134   :  { %v1484_v54 = vpop.f32.mrb[19].mxu0 }
 0x135   :  { %v564_v26 = vadd.f32 %v1447_v15, %v283_v38  ;;  %v1485_v34 = vadd.f32 %v1484_v54, %v1483_v11  ;;  %v1536_v9 = vpop.f32.mrb[16].mxu1 }
 0x136   :  { %v1537_v43 = vpop.f32.mrb[17].mxu1 }
 0x137   :  { %v711_v10 = vadd.f32 %v1485_v34, %v522_v41  ;;  %v1486_v42 = vpop.f32.mrb[20].mxu0  ;;  %v1538_v3 = vadd.f32 %v1537_v43, %v1536_v9 }
 0x138   :  { %v1487_v8 = vpop.f32.mrb[21].mxu0 }
 0x139   :  { %v1488_v4 = vadd.f32 %v1487_v8, %v1486_v42  ;;  %v873_v28 = vadd.f32 %v1538_v3, %v702_v31  ;;  %v1539_v50 = vpop.f32.mrb[18].mxu1 }
 0x13a   :  { %v1540_v57 = vpop.f32.mrb[19].mxu1 }
 0x13b   :  { %v720_v29 = vadd.f32 %v1488_v4, %v529_v0  ;;  %v1489_v13 = vpop.f32.mrb[22].mxu0  ;;  %v1541_v16 = vadd.f32 %v1540_v57, %v1539_v50 }
 0x13c   :  { %v1490_v24 = vpop.f32.mrb[23].mxu0 }
 0x13d   :  { %v1491_v2 = vadd.f32 %v1490_v24, %v1489_v13  ;;  %v884_v47 = vadd.f32 %v1541_v16, %v711_v10  ;;  %v1542_v30 = vpop.f32.mrb[20].mxu1 }
 0x13e   :  { %v1543_v61 = vpop.f32.mrb[21].mxu1 }
 0x13f   :  { %v729_v39 = vadd.f32 %v1491_v2, %v536_v35  ;;  %v1492_v33 = vpop.f32.mrb[24].mxu0  ;;  %v1544_v17 = vadd.f32 %v1543_v61, %v1542_v30 }
 0x140   :  { %v1493_v6 = vpop.f32.mrb[25].mxu0 }
 0x141   :  { %v1494_v41 = vadd.f32 %v1493_v6, %v1492_v33  ;;  %v895_v14 = vadd.f32 %v1544_v17, %v720_v29  ;;  %v1545_v18 = vpop.f32.mrb[22].mxu1 }
 0x142   :  { %v1546_v21 = vpop.f32.mrb[23].mxu1 }
 0x143   :  { %v738_v56 = vadd.f32 %v1494_v41, %v543_v51  ;;  %v1495_v22 = vpop.f32.mrb[26].mxu0  ;;  %v1547_v27 = vadd.f32 %v1546_v21, %v1545_v18 }
 0x144   :  { %v1496_v40 = vpop.f32.mrb[27].mxu0 }
 0x145   :  { %v1497_v0 = vadd.f32 %v1496_v40, %v1495_v22  ;;  %v906_v46 = vadd.f32 %v1547_v27, %v729_v39  ;;  %v1548_v45 = vpop.f32.mrb[24].mxu1 }
 0x146   :  { %v1549_v20 = vpop.f32.mrb[25].mxu1 }
 0x147   :  { %v747_v63 = vadd.f32 %v1497_v0, %v550_v49  ;;  %v1498_v32 = vpop.f32.mrb[28].mxu0  ;;  %v1550_v48 = vadd.f32 %v1549_v20, %v1548_v45 }
 0x148   :  { %v1499_v52 = vpop.f32.mrb[29].mxu0 }
 0x149   :  { %v1500_v35 = vadd.f32 %v1499_v52, %v1498_v32  ;;  %v917_v1 = vadd.f32 %v1550_v48, %v738_v56  ;;  %v1551_v62 = vpop.f32.mrb[26].mxu1 }
 0x14a   :  { %v1552_v7 = vpop.f32.mrb[27].mxu1 }
 0x14b   :  { %v756_v37 = vadd.f32 %v1500_v35, %v557_v44  ;;  %v1501_v23 = vpop.f32.mrb[30].mxu0  ;;  %v1553_v36 = vadd.f32 %v1552_v7, %v1551_v62 }
 0x14c   :  { %v1502_v53 = vpop.f32.mrb[31].mxu0 }
 0x14d   :  { %v1503_v51 = vadd.f32 %v1502_v53, %v1501_v23  ;;  %v928_v19 = vadd.f32 %v1553_v36, %v747_v63  ;;  %v1554_v60 = vpop.f32.mrb[28].mxu1 }
 0x14e   :  { %v1555_v25 = vpop.f32.mrb[29].mxu1 }
 0x14f   :  { %v765_v59 = vadd.f32 %v1503_v51, %v564_v26  ;;  %v1592_v58 = vpop.f32.mrb[32].mxu0  ;;  %v1556_v38 = vadd.f32 %v1555_v25, %v1554_v60 }
 0x150   :  { %v1593_v55 = vpop.f32.mrb[33].mxu0 }
 0x151   :  { %v939_v49 = vadd.f32 %v1556_v38, %v756_v37  ;;  %v1594_v12 = vadd.f32 %v1593_v55, %v1592_v58  ;;  %v1557_v5 = vpop.f32.mrb[30].mxu1 }
 0x152   :  { %v1558_v31 = vpop.f32.mrb[31].mxu1 }
 0x153   :  { %v1118_v11 = vadd.f32 %v1594_v12, %v873_v28  ;;  %v1595_v15 = vpop.f32.mrb[34].mxu0  ;;  %v1559_v54 = vadd.f32 %v1558_v31, %v1557_v5 }
 0x154   :  { %v1596_v34 = vpop.f32.mrb[35].mxu0 }
 0x155   :  { %v950_v44 = vadd.f32 %v1559_v54, %v765_v59  ;;  %v1597_v9 = vadd.f32 %v1596_v34, %v1595_v15  ;;  %v1648_v43 = vpop.f32.mrb[32].mxu1 }
 0x156   :  { %v1649_v10 = vpop.f32.mrb[33].mxu1 }
 0x157   :  { %v1125_v42 = vadd.f32 %v1597_v9, %v884_v47  ;;  %v1598_v3 = vpop.f32.mrb[36].mxu0  ;;  %v1650_v8 = vadd.f32 %v1649_v10, %v1648_v43 }
 0x158   :  { %v1599_v4 = vpop.f32.mrb[37].mxu0 }
 0x159   :  { %v1600_v26 = vadd.f32 %v1599_v4, %v1598_v3  ;;  %v1271_v50 = vadd.f32 %v1650_v8, %v1118_v11  ;;  %v1651_v57 = vpop.f32.mrb[34].mxu1 }
 0x15a   :  { %v1652_v29 = vpop.f32.mrb[35].mxu1 }
 0x15b   :  { %v1132_v13 = vadd.f32 %v1600_v26, %v895_v14  ;;  %1323 = vst [vmem:[%s2681_s3] sm:$0xff] %v1271_v50  ;;  %v1601_v28 = vpop.f32.mrb[38].mxu0  ;;  %v1653_v16 = vadd.f32 %v1652_v29, %v1651_v57 }
 0x15c   :  { %v1602_v24 = vpop.f32.mrb[39].mxu0 }
 0x15d   :  { %v1603_v2 = vadd.f32 %v1602_v24, %v1601_v28  ;;  %v1278_v30 = vadd.f32 %v1653_v16, %v1125_v42  ;;  %v1654_v61 = vpop.f32.mrb[36].mxu1 }
 0x15e   :  { %v1655_v39 = vpop.f32.mrb[37].mxu1 }
 0x15f   :  { %v1139_v47 = vadd.f32 %v1603_v2, %v906_v46  ;;  %1324 = vst [vmem:[%s2681_s3 + $0x8] sm:$0xff] %v1278_v30  ;;  %v1604_v33 = vpop.f32.mrb[40].mxu0  ;;  %v1656_v17 = vadd.f32 %v1655_v39, %v1654_v61 }
 0x160   :  { %v1605_v6 = vpop.f32.mrb[41].mxu0 }
 0x161   :  { %v1606_v41 = vadd.f32 %v1605_v6, %v1604_v33  ;;  %v1285_v14 = vadd.f32 %v1656_v17, %v1132_v13  ;;  %v1657_v18 = vpop.f32.mrb[38].mxu1 }
 0x162   :  { %v1658_v21 = vpop.f32.mrb[39].mxu1 }
 0x163   :  { %v1146_v56 = vadd.f32 %v1606_v41, %v917_v1  ;;  %1325 = vst [vmem:[%s2681_s3 + $0x10] sm:$0xff] %v1285_v14  ;;  %v1607_v22 = vpop.f32.mrb[42].mxu0  ;;  %v1659_v27 = vadd.f32 %v1658_v21, %v1657_v18 }
 0x164   :  { %v1608_v40 = vpop.f32.mrb[43].mxu0 }
 0x165   :  { %v1609_v0 = vadd.f32 %v1608_v40, %v1607_v22  ;;  %v1292_v46 = vadd.f32 %v1659_v27, %v1139_v47  ;;  %v1660_v45 = vpop.f32.mrb[40].mxu1 }
 0x166   :  { %v1661_v20 = vpop.f32.mrb[41].mxu1 }
 0x167   :  { %v1153_v63 = vadd.f32 %v1609_v0, %v928_v19  ;;  %1326 = vst [vmem:[%s2681_s3 + $0x18] sm:$0xff] %v1292_v46  ;;  %v1610_v32 = vpop.f32.mrb[44].mxu0  ;;  %v1662_v48 = vadd.f32 %v1661_v20, %v1660_v45 }
 0x168   :  { %v1611_v52 = vpop.f32.mrb[45].mxu0 }
 0x169   :  { %v1612_v35 = vadd.f32 %v1611_v52, %v1610_v32  ;;  %v1299_v1 = vadd.f32 %v1662_v48, %v1146_v56  ;;  %v1663_v62 = vpop.f32.mrb[42].mxu1 }
 0x16a   :  { %v1664_v7 = vpop.f32.mrb[43].mxu1 }
 0x16b   :  { %v1160_v37 = vadd.f32 %v1612_v35, %v939_v49  ;;  %1327 = vst [vmem:[%s2681_s3 + $0x20] sm:$0xff] %v1299_v1  ;;  %v1613_v23 = vpop.f32.mrb[46].mxu0  ;;  %v1665_v36 = vadd.f32 %v1664_v7, %v1663_v62 }
 0x16c   :  { %v1614_v53 = vpop.f32.mrb[47].mxu0 }
 0x16d   :  { %v1615_v51 = vadd.f32 %v1614_v53, %v1613_v23  ;;  %v1306_v19 = vadd.f32 %v1665_v36, %v1153_v63  ;;  %v1666_v60 = vpop.f32.mrb[44].mxu1 }
 0x16e   :  { %v1667_v25 = vpop.f32.mrb[45].mxu1 }
 0x16f   :  { %v1167_v59 = vadd.f32 %v1615_v51, %v950_v44  ;;  %1328 = vst [vmem:[%s2681_s3 + $0x28] sm:$0xff] %v1306_v19  ;;  %v1668_v58 = vadd.f32 %v1667_v25, %v1666_v60 }
 0x171   :  { %v1313_v38 = vadd.f32 %v1668_v58, %v1160_v37  ;;  %v1669_v55 = vpop.f32.mrb[46].mxu1 }
 0x172   :  { %v1670_v49 = vpop.f32.mrb[47].mxu1 }
 0x173   :  { %1329 = vst [vmem:[%s2681_s3 + $0x30] sm:$0xff] %v1313_v38  ;;  %v1671_v12 = vadd.f32 %v1670_v49, %v1669_v55 }
 0x175   :  { %v1320_v5 = vadd.f32 %v1671_v12, %v1167_v59 }
 0x177   :  { %1330 = vst [vmem:[%s2681_s3 + $0x38] sm:$0xff] %v1320_v5 }

</bundles_post_ra>
